<compile_context>
chip_gen: v5e
topology: v5e:2x2
jax: 0.10.0
libtpu: 0.0.40
codegen_flags: <defaults>
</compile_context>

<pallas_src>
import jax
import jax.numpy as jnp
from jax.experimental import pallas as pl
from jax.experimental.pallas import tpu as pltpu


def _pick_t_hw(hw, tb, c, itemsize, budget_bytes=6 * 1024 * 1024):
    """Largest spatial tile (multiple of 128) whose double-buffered copy stays small."""
    if hw <= 128:
        return hw
    cap = max(128, (budget_bytes // max(1, tb * c * itemsize)) // 128 * 128)
    if hw <= cap:
        return hw                      # whole spatial extent fits in one tile
    return cap                         # multiple of 128 -> satisfies (8,128) rule


def channel_attention(x_nchw, w1, w2, *, t_hw=None, b_tile=None):
    """x_nchw: (B, C, H, W); w1: (C//r, C); w2: (C, C//r). Returns (B, C, 1, 1)."""
    B, C, H, W = x_nchw.shape
    HW = H * W
    hidden = w1.shape[0]
    assert w1.shape == (hidden, C) and w2.shape == (C, hidden)

    x_flat = x_nchw.reshape(B, C, HW)

    tb = b_tile if b_tile is not None else (B if B <= 8 else 8)
    tb = min(tb, B)
    if t_hw is None:
        t_hw = _pick_t_hw(HW, tb, C, x_flat.dtype.itemsize)
    t_hw = min(t_hw, HW)
    if t_hw < HW:
        assert t_hw % 128 == 0, "spatial tile must be a multiple of 128 when tiling"

    grid_b = pl.cdiv(B, tb)
    grid_hw = pl.cdiv(HW, t_hw)
    needs_mask = (HW % t_hw) != 0
    inv_hw = 1.0 / float(HW)

    def kernel(x_ref, w1_ref, w2_ref, o_ref, sum_acc, max_acc):
        k = pl.program_id(1)

        @pl.when(k == 0)
        def _init():
            sum_acc[...] = jnp.zeros_like(sum_acc)
            max_acc[...] = jnp.full_like(max_acc, -jnp.inf)

        x = x_ref[...]                                     # (tb, C, t_hw), input dtype
        if needs_mask:
            lane = jax.lax.broadcasted_iota(jnp.int32, x.shape, 2)
            valid = (k * t_hw + lane) < HW
            x_sum = jnp.where(valid, x, jnp.zeros((), x.dtype))
            x_max = jnp.where(valid, x, jnp.full((), -jnp.inf, x.dtype))
        else:
            x_sum = x
            x_max = x

        # Accumulate the mean in f32; keep the max reduction in the input dtype.
        sum_acc[...] += jnp.sum(x_sum.astype(jnp.float32), axis=-1)
        max_acc[...] = jnp.maximum(
            max_acc[...], jnp.max(x_max, axis=-1).astype(jnp.float32))

        @pl.when(k == pl.num_programs(1) - 1)
        def _finalize():
            avg = sum_acc[...] * inv_hw                    # (tb, C) f32
            mx = max_acc[...]                              # (tb, C) f32
            # Fuse the two shared_MLP passes: one (2*tb, C) matmul pipeline.
            v = jnp.concatenate([avg, mx], axis=0)         # (2*tb, C)
            w1f = w1_ref[...].astype(jnp.float32)          # (hidden, C)
            w2f = w2_ref[...].astype(jnp.float32)          # (C, hidden)
            h = jax.lax.dot_general(v, w1f, (((1,), (1,)), ((), ())),
                                    preferred_element_type=jnp.float32)
            h = jnp.maximum(h, 0.0)                        # ReLU
            y = jax.lax.dot_general(h, w2f, (((1,), (1,)), ((), ())),
                                    preferred_element_type=jnp.float32)
            out = jax.nn.sigmoid(y[:tb] + y[tb:])          # (tb, C)
            o_ref[...] = out.astype(o_ref.dtype)

    x_tile_bytes = tb * C * t_hw * x_flat.dtype.itemsize
    vmem_bytes = int(min(max(3 * x_tile_bytes + (4 << 20), 16 << 20), 96 << 20))

    out = pl.pallas_call(
        kernel,
        out_shape=jax.ShapeDtypeStruct((B, C), x_nchw.dtype),
        grid_spec=pltpu.PrefetchScalarGridSpec(
            num_scalar_prefetch=0,
            grid=(grid_b, grid_hw),                        # reduction axis last
            in_specs=[
                pl.BlockSpec((tb, C, t_hw), lambda b, k: (b, 0, k)),
                pl.BlockSpec((hidden, C), lambda b, k: (0, 0)),   # VMEM-resident
                pl.BlockSpec((C, hidden), lambda b, k: (0, 0)),   # VMEM-resident
            ],
            out_specs=pl.BlockSpec((tb, C), lambda b, k: (b, 0)),
            scratch_shapes=[
                pltpu.VMEM((tb, C), jnp.float32),          # running sum
                pltpu.VMEM((tb, C), jnp.float32),          # running max
            ],
        ),
        compiler_params=pltpu.CompilerParams(
            dimension_semantics=("parallel", "arbitrary"),
            vmem_limit_bytes=vmem_bytes,
        ),
    )(x_flat, w1, w2)

    return out.reshape(B, C, 1, 1)


if __name__ == "__main__":
    # Small shapes consistent with the module: channel divisible by ratio=16.
    B, C, H, W = 2, 64, 16, 16
    ratio = 16
    hidden = C // ratio  # 4

    key = jax.random.PRNGKey(0)
    kx, k1, k2 = jax.random.split(key, 3)

    x = jax.random.normal(kx, (B, C, H, W), dtype=jnp.float32)
    # Conv2d(C, C//r, 1, bias=False) weight (C//r, C, 1, 1) -> squeeze to (C//r, C)
    w1 = jax.random.normal(k1, (hidden, C), dtype=jnp.float32) * (1.0 / jnp.sqrt(C))
    # Conv2d(C//r, C, 1, bias=False) weight (C, C//r, 1, 1) -> squeeze to (C, C//r)
    w2 = jax.random.normal(k2, (C, hidden), dtype=jnp.float32) * (1.0 / jnp.sqrt(hidden))

    # t_hw=128 forces a 2-step spatial reduction to exercise the pipelined path.
    out = channel_attention(x, w1, w2, t_hw=128)
    out = jax.block_until_ready(out)

    # Pure-JAX reference check.
    avg = jnp.mean(x, axis=(2, 3))
    mx = jnp.max(x, axis=(2, 3))
    mlp = lambda v: jnp.maximum(v @ w1.T, 0.0) @ w2.T
    ref = jax.nn.sigmoid(mlp(avg) + mlp(mx)).reshape(B, C, 1, 1)
    assert out.shape == (B, C, 1, 1)
    assert jnp.allclose(out, ref, atol=1e-5, rtol=1e-5), "mismatch vs reference"

    print("KERNEL_OK")
</pallas_src>

<mosaic_0001>
module attributes {stable_mosaic.version = 11 : i64} {
  func.func @kernel(%arg0: i32, %arg1: i32, %arg2: memref<2x64x128xf32, #tpu.memory_space<vmem>>, %arg3: memref<4x64xf32, #tpu.memory_space<vmem>>, %arg4: memref<64x4xf32, #tpu.memory_space<vmem>>, %arg5: memref<2x64xf32, #tpu.memory_space<vmem>>, %arg6: memref<2x64xf32, #tpu.memory_space<vmem>>, %arg7: memref<2x64xf32, #tpu.memory_space<vmem>>) attributes {dimension_semantics = [#tpu.dimension_semantics<parallel>, #tpu.dimension_semantics<arbitrary>], iteration_bounds = array<i64: 1, 2>, scalar_prefetch = 0 : i64, scratch_operands = 2 : i64, tpu.core_type = #tpu.core_type<tc>, window_params = [{transform_indices = @transform_0, window_bounds = array<i64: 2, 64, 128>}, {pipeline_mode = #tpu.pipeline_mode<synchronous>, transform_indices = @transform_1, window_bounds = array<i64: 4, 64>}, {pipeline_mode = #tpu.pipeline_mode<synchronous>, transform_indices = @transform_2, window_bounds = array<i64: 64, 4>}, {transform_indices = @transform_3, window_bounds = array<i64: 2, 64>}]} {
    %c0_i32 = arith.constant 0 : i32
    %0 = arith.cmpi eq, %arg1, %c0_i32 : i32
    %1 = arith.extui %0 : i1 to i32
    %c0_i32_0 = arith.constant 0 : i32
    %2 = arith.cmpi ne, %1, %c0_i32_0 : i32
    scf.if %2 {
      %cst_13 = arith.constant 0.000000e+00 : f32
      %15 = vector.broadcast %cst_13 : f32 to vector<2x64xf32>
      %c0_14 = arith.constant 0 : index
      %c0_15 = arith.constant 0 : index
      %16 = vector.load %arg6[%c0_14, %c0_15] : memref<2x64xf32, #tpu.memory_space<vmem>>, vector<2x64xf32>
      tpu.vector_store %arg6[%c0_14, %c0_15], %15 {strides = array<i32>} : memref<2x64xf32, #tpu.memory_space<vmem>>, vector<2x64xf32>,
      %cst_16 = arith.constant 0xFF800000 : f32
      %17 = vector.broadcast %cst_16 : f32 to vector<2x64xf32>
      %c0_17 = arith.constant 0 : index
      %c0_18 = arith.constant 0 : index
      %18 = vector.load %arg7[%c0_17, %c0_18] : memref<2x64xf32, #tpu.memory_space<vmem>>, vector<2x64xf32>
      tpu.vector_store %arg7[%c0_17, %c0_18], %17 {strides = array<i32>} : memref<2x64xf32, #tpu.memory_space<vmem>>, vector<2x64xf32>,
    } else {
    }
    %c0 = arith.constant 0 : index
    %c0_1 = arith.constant 0 : index
    %c0_2 = arith.constant 0 : index
    %3 = vector.load %arg2[%c0, %c0_1, %c0_2] : memref<2x64x128xf32, #tpu.memory_space<vmem>>, vector<2x64x128xf32>
    %c0_3 = arith.constant 0 : index
    %c0_4 = arith.constant 0 : index
    %4 = vector.load %arg6[%c0_3, %c0_4] : memref<2x64xf32, #tpu.memory_space<vmem>>, vector<2x64xf32>
    %cst = arith.constant dense<0.000000e+00> : vector<2x64xf32>
    %5 = vector.multi_reduction <add>, %3, %cst [2] : vector<2x64x128xf32> to vector<2x64xf32>
    %6 = arith.addf %4, %5 : vector<2x64xf32>
    %c0_5 = arith.constant 0 : index
    %c0_6 = arith.constant 0 : index
    %7 = vector.load %arg6[%c0_5, %c0_6] : memref<2x64xf32, #tpu.memory_space<vmem>>, vector<2x64xf32>
    tpu.vector_store %arg6[%c0_5, %c0_6], %6 {strides = array<i32>} : memref<2x64xf32, #tpu.memory_space<vmem>>, vector<2x64xf32>,
    %c0_7 = arith.constant 0 : index
    %c0_8 = arith.constant 0 : index
    %8 = vector.load %arg7[%c0_7, %c0_8] : memref<2x64xf32, #tpu.memory_space<vmem>>, vector<2x64xf32>
    %cst_9 = arith.constant dense<0xFF800000> : vector<2x64xf32>
    %9 = vector.multi_reduction <maximumf>, %3, %cst_9 [2] : vector<2x64x128xf32> to vector<2x64xf32>
    %10 = arith.maximumf %8, %9 : vector<2x64xf32>
    %c0_10 = arith.constant 0 : index
    %c0_11 = arith.constant 0 : index
    %11 = vector.load %arg7[%c0_10, %c0_11] : memref<2x64xf32, #tpu.memory_space<vmem>>, vector<2x64xf32>
    tpu.vector_store %arg7[%c0_10, %c0_11], %10 {strides = array<i32>} : memref<2x64xf32, #tpu.memory_space<vmem>>, vector<2x64xf32>,
    %c1_i32 = arith.constant 1 : i32
    %12 = arith.cmpi eq, %arg1, %c1_i32 : i32
    %13 = arith.extui %12 : i1 to i32
    %c0_i32_12 = arith.constant 0 : i32
    %14 = arith.cmpi ne, %13, %c0_i32_12 : i32
    scf.if %14 {
      %c0_13 = arith.constant 0 : index
      %c0_14 = arith.constant 0 : index
      %15 = vector.load %arg6[%c0_13, %c0_14] : memref<2x64xf32, #tpu.memory_space<vmem>>, vector<2x64xf32>
      %cst_15 = arith.constant 3.906250e-03 : f32
      %16 = vector.broadcast %cst_15 : f32 to vector<2x64xf32>
      %17 = arith.mulf %15, %16 : vector<2x64xf32>
      %c0_16 = arith.constant 0 : index
      %c0_17 = arith.constant 0 : index
      %18 = vector.load %arg7[%c0_16, %c0_17] : memref<2x64xf32, #tpu.memory_space<vmem>>, vector<2x64xf32>
      %19 = tpu.concatenate %17, %18 in 0 : vector<2x64xf32>, vector<2x64xf32> -> vector<4x64xf32>
      %c0_18 = arith.constant 0 : index
      %c0_19 = arith.constant 0 : index
      %20 = vector.load %arg3[%c0_18, %c0_19] : memref<4x64xf32, #tpu.memory_space<vmem>>, vector<4x64xf32>
      %c0_20 = arith.constant 0 : index
      %c0_21 = arith.constant 0 : index
      %21 = vector.load %arg4[%c0_20, %c0_21] : memref<64x4xf32, #tpu.memory_space<vmem>>, vector<64x4xf32>
      %cst_22 = arith.constant dense<0.000000e+00> : vector<4x4xf32>
      %22 = tpu.matmul %19, %20, %cst_22 {dimension_numbers = #tpu.dot_dimension_numbers<[1], [1], [0], [0], [0, 0, 1, 0], [], []>} : vector<4x64xf32>, vector<4x64xf32>, vector<4x4xf32> -> vector<4x4xf32>
      %cst_23 = arith.constant 0.000000e+00 : f32
      %23 = vector.broadcast %cst_23 : f32 to vector<4x4xf32>
      %24 = arith.maximumf %22, %23 : vector<4x4xf32>
      %cst_24 = arith.constant dense<0.000000e+00> : vector<4x64xf32>
      %25 = tpu.matmul %24, %21, %cst_24 {dimension_numbers = #tpu.dot_dimension_numbers<[1], [1], [0], [0], [0, 0, 1, 0], [], []>} : vector<4x4xf32>, vector<64x4xf32>, vector<4x64xf32> -> vector<4x64xf32>
      %26 = vector.extract_strided_slice %25 {offsets = [0, 0], sizes = [2, 64], strides = [1, 1]} : vector<4x64xf32> to vector<2x64xf32>
      %27 = vector.extract_strided_slice %25 {offsets = [2, 0], sizes = [2, 64], strides = [1, 1]} : vector<4x64xf32> to vector<2x64xf32>
      %28 = arith.addf %26, %27 : vector<2x64xf32>
      %29 = arith.negf %28 : vector<2x64xf32>
      %30 = math.exp %29 : vector<2x64xf32>
      %cst_25 = arith.constant 1.000000e+00 : f32
      %31 = vector.broadcast %cst_25 : f32 to vector<2x64xf32>
      %32 = arith.addf %31, %30 : vector<2x64xf32>
      %33 = arith.divf %31, %32 : vector<2x64xf32>
      %c0_26 = arith.constant 0 : index
      %c0_27 = arith.constant 0 : index
      %34 = vector.load %arg5[%c0_26, %c0_27] : memref<2x64xf32, #tpu.memory_space<vmem>>, vector<2x64xf32>
      tpu.vector_store %arg5[%c0_26, %c0_27], %33 {strides = array<i32>} : memref<2x64xf32, #tpu.memory_space<vmem>>, vector<2x64xf32>,
    } else {
    }
    return
  }
  func.func @transform_0(%arg0: i32, %arg1: i32) -> (i32, i32, i32) {
    %c0_i32 = arith.constant 0 : i32
    %c0_i32_0 = arith.constant 0 : i32
    return %arg0, %c0_i32, %arg1 : i32, i32, i32
  }
  func.func @transform_1(%arg0: i32, %arg1: i32) -> (i32, i32) {
    %c0_i32 = arith.constant 0 : i32
    %c0_i32_0 = arith.constant 0 : i32
    %c0_i32_1 = arith.constant 0 : i32
    return %c0_i32, %c0_i32_0 : i32, i32
  }
  func.func @transform_2(%arg0: i32, %arg1: i32) -> (i32, i32) {
    %c0_i32 = arith.constant 0 : i32
    %c0_i32_0 = arith.constant 0 : i32
    %c0_i32_1 = arith.constant 0 : i32
    return %c0_i32, %c0_i32_0 : i32, i32
  }
  func.func @transform_3(%arg0: i32, %arg1: i32) -> (i32, i32) {
    %c0_i32 = arith.constant 0 : i32
    %c0_i32_0 = arith.constant 0 : i32
    return %arg0, %c0_i32 : i32, i32
  }
}

</mosaic_0001>

<bundles_post_ra>
// kernel: tpu_custom_call.1
= control target key start
LH: loop header
LB: loop body
LE: loop exit
PB: predicated region body
PF: predicated region fallthrough
CT: control target
= control target key end

     0   :  { %8 = vsyncpa [#allocation5], 0  ;;  %s1070_s0 = inlined_call_operand.hbm [shape: f32[2,64,256], index: 0, kind: input, shape index: {}]   ;;  %s1071_s1 = inlined_call_operand.vmem [shape: f32[4,64], index: 1, kind: input, shape index: {}]   ;;  %s1072_s2 = inlined_call_operand.vmem [shape: f32[64,4], index: 2, kind: input, shape index: {}]   ;;  %s1073_s3 = inlined_call_operand.hbm [shape: f32[2,64], index: 3, kind: output, shape index: {}]  }
   0x1   :  { %10 = vsyncpa [#allocation5 + $0x1], 0 }
   0x2   :  { %11 = vsyncpa [#allocation6], 0  ;;  %s839_s12 = smov 0   ;;  %s841_s13 = smov 0  }
   0x3   :  { %s843_s14 = smov 0   ;;  %s845_s15 = smov 0  }
   0x4   :  { %s847_s16 = smov 0   ;;  %s849_s17 = smov 0  }
   0x5 LB: > { %s603_s18 = sadd.s32 4294967295, %s811_s17   ;;  %s26_s19 = sadd.s32 1, %s807_s16  ;;  %s811_s17 = sphi %s849_s17, %s17_s17   ;;  %s807_s16 = sphi %s847_s16, %s1080_s16   ;;  %s803_s15 = sphi %s845_s15, %s1079_s15   ;;  %s799_s14 = sphi %s843_s14, %s1078_s14   ;;  %s795_s13 = sphi %s841_s13, %s1077_s13   ;;  %s791_s12 = sphi %s839_s12, %s1076_s12  }
   0x6   : > { %p27_p0 = scmp.ge.s32.totalorder %s26_s19, 2  ;;  %s38_s20 = sadd.s32 1, %s799_s14 }
   0x7   : > { %p45_p1 = scmp.ne.s32.totalorder %s799_s14, %s795_s13  ;;  %p46_p2 = scmp.eq.s32.totalorder %s811_s17, 0 }
   0x8   : > { %s1082_s19 = smov (%p27_p0, %s26_s19), 0  ;;  %p51_p4 = scmp.ne.s32.totalorder %s795_s13, %s791_s12 }
   0x9   : > { %p875_p3 = por %p46_p2, %p45_p1  ;;  %s34_s22 = ssub.s32 %s807_s16, %s1082_s19 }
   0xa   : > { %p52_p5 = scmp.eq.s32.totalorder %s603_s18, 0  ;;  %p36_p6 = scmp.eq.s32.totalorder %s34_s22, 0 }
   0xb   : > { %p638_p8 = scmp.lt.s32.totalorder %s811_s17, 2  ;;  %s149_s25 = sand.u32 1, %s799_s14  }
   0xc   : > { %p884_p7 = por %p52_p5, %p51_p4  ;;  %s607_s26 = sshll.u32 %s807_s16, 3 }
   0xd   : > { %s890_s24 = scalar_select %p36_p6, %s799_s14, %s38_s20  }
   0xe   : > { %s606_s27 = sshll.u32 %s149_s25, 7  ;;  %s160_s30 = scalar_lea.hbm %s1070_s0, %s607_s26 }
   0xf   : > { %s161_s4 = sshll.u32 %s160_s30, 4  ;;  %s153_s5 = scalar_lea.vmem [#allocation4], %s606_s27  ;;  %s162_s4 = int_to_ptr.hbm [resolvable:$true] %s161_s4 }
  0x10   : > { %s163_s6 = sshll.u32 %s153_s5, 4  ;;  %p635_p9 = pnand %p638_p8, %p875_p3  ;;  %s164_s6 = int_to_ptr.vmem [resolvable:$true] %s163_s6 }
  0x11   : > { %p608_p10 = scmp.ge.s32.totalorder %s811_s17, 1  ;;  %s150_s7 = scalar_lea.sflag [#allocation5], %s149_s25 }
  0x12   : > { %s813_s8 = smov 256   ;;  %s814_s9 = smov 128  }
  0x13   : > { %s815_s10 = smov 8   ;;  %p171_p11 = scmp.lt.s32.totalorder %s811_s17, 3 }
  0x14   : > { %637 = dma.hbm_to_vmem [thread:$0]  (!%p635_p9), %s162_s4, 2048, %s164_s6, %s150_s7, %s813_s8, %s814_s9, %s815_s10  }
  0x15   : > { %p172_p12 = pnand %p608_p10, %p171_p11 }
  0x16   : > { %s177_s11 = sand.u32 (!%p172_p12), 1, %s795_s13  }
  0x17   : > { %175 = sbr.rel (%p172_p12) target bundleno = 547 (0x223), region = 32  ;;  %s609_s12 = sshll.u32 (!%p172_p12), %s177_s11, 7 }
  0x18   : > { %s178_s20 = scalar_lea.sflag (!%p172_p12), [#allocation5], %s177_s11  ;;  %s902_s22 = scalar_lea.vmem (!%p172_p12), [#allocation4], %s609_s12 }
  0x1c   : > { %782 = dma.done.wait (%p884_p7), %s178_s20, 2048  }
  0x1d   : > { %784 = vsyncadd (%p884_p7), %s178_s20, 4294965248  ;;  %p610_p13 = scmp.ne.s32.totalorder %s803_s15, 0 }
  0x1f   : > { %204 = sbr.rel (%p610_p13) target bundleno = 39 (0x27), region = 40 }
  0x24   : > { %vm205_vm0 = vcmask 517120   ;;  %v816_v0 = vmov 0.0   ;;  %v817_v1 = vmov -inf  }
  0x25   : > { %206 = vst.msk [vmem:[#allocation2] sm:$0x3] %vm205_vm0, %v816_v0 }
  0x26   : > { %207 = vst.msk [vmem:[#allocation3] sm:$0x3] %vm205_vm0, %v817_v1 }
  0x27 PF: > { %v212_v2 = vld [vmem:[%s902_s22 + $0x20] sm:$0xff]  ;;  %v210_v3 = vld [vmem:[%s902_s22 + $0x10] sm:$0xff]  ;;  %v213_v5 = vld [vmem:[%s902_s22 + $0x28] sm:$0xff]  ;;  %v273_v18 = vlaneseq  ;;  %vm278_vm1 = vcmask 130112   ;;  %vm282_vm2 = vcmask 195712   ;;  %vm286_vm3 = vcmask 261312  }
  0x28   : > { %v208_v4 = vld [vmem:[%s902_s22] sm:$0xff]  ;;  %233 = vadd.xlane.f32.xlu2 %v212_v2  ;;  %229 = vadd.xlane.f32.xlu1 %v210_v3  ;;  %v211_v6 = vld [vmem:[%s902_s22 + $0x18] sm:$0xff]  ;;  %v209_v7 = vld [vmem:[%s902_s22 + $0x8] sm:$0xff]  ;;  %vm290_vm4 = vcmask 326912   ;;  %vm294_vm5 = vcmask 392512   ;;  %vm298_vm6 = vcmask 458112  }
  0x29   : > { %225 = vadd.xlane.f32.xlu0 %v208_v4  ;;  %v216_v8 = vld [vmem:[%s902_s22 + $0x40] sm:$0xff]  ;;  %v215_v9 = vld [vmem:[%s902_s22 + $0x38] sm:$0xff]  ;;  %v214_v10 = vld [vmem:[%s902_s22 + $0x30] sm:$0xff]  ;;  %v925_v22 = vand.u32 127, %v273_v18  ;;  %vm302_vm7 = vcmask 523712   ;;  %vm319_vm8 = vcmask 1041409  }
  0x2a   : > { %v219_v11 = vld [vmem:[%s902_s22 + $0x58] sm:$0xff]  ;;  %v218_v12 = vld [vmem:[%s902_s22 + $0x50] sm:$0xff]  ;;  %v217_v13 = vld [vmem:[%s902_s22 + $0x48] sm:$0xff]  ;;  %vm323_vm9 = vcmask 517120   ;;  %p611_p0 = scmp.ne.s32.totalorder %s803_s15, 1 }
  0x2b   : > { %v222_v14 = vld [vmem:[%s902_s22 + $0x70] sm:$0xff]  ;;  %v221_v15 = vld [vmem:[%s902_s22 + $0x68] sm:$0xff]  ;;  %v220_v16 = vld [vmem:[%s902_s22 + $0x60] sm:$0xff]  ;;  %v928_v23 = vadd.s32 4294967288, %v925_v22  ;;  %v931_v24 = vadd.s32 4294967280, %v925_v22  ;;  %v934_v26 = vadd.s32 4294967272, %v925_v22 }
  0x2c   : > { %v223_v17 = vld [vmem:[%s902_s22 + $0x78] sm:$0xff]  ;;  %v937_v28 = vadd.s32 4294967264, %v925_v22  ;;  %v955_v61 = vadd.s32 4294967256, %v925_v22  ;;  %v959_v63 = vadd.s32 4294967248, %v925_v22 }
  0x30   : > { %235 = vadd.xlane.f32.xlu2 %v213_v5  ;;  %231 = vadd.xlane.f32.xlu1 %v211_v6 }
  0x31   : > { %227 = vadd.xlane.f32.xlu0 %v209_v7 }
  0x38   : > { %241 = vadd.xlane.f32.xlu2 %v216_v8  ;;  %239 = vadd.xlane.f32.xlu1 %v215_v9 }
  0x39   : > { %237 = vadd.xlane.f32.xlu0 %v214_v10 }
  0x40   : > { %247 = vadd.xlane.f32.xlu2 %v219_v11  ;;  %245 = vadd.xlane.f32.xlu1 %v218_v12 }
  0x41   : > { %243 = vadd.xlane.f32.xlu0 %v217_v13 }
  0x48   : > { %253 = vadd.xlane.f32.xlu2 %v222_v14  ;;  %251 = vadd.xlane.f32.xlu1 %v221_v15 }
  0x49   : > { %249 = vadd.xlane.f32.xlu0 %v220_v16 }
  0x50   : > { %342 = vmax.xlane.f32.xlu2 %v216_v8  ;;  %328 = vmax.xlane.f32.xlu1 %v209_v7 }
  0x51   : > { %326 = vmax.xlane.f32.xlu0 %v208_v4 }
  0x58   : > { %346 = vmax.xlane.f32.xlu2 %v218_v12  ;;  %330 = vmax.xlane.f32.xlu1 %v210_v3 }
  0x59   : > { %344 = vmax.xlane.f32.xlu0 %v217_v13 }
  0x60   : > { %334 = vmax.xlane.f32.xlu2 %v212_v2  ;;  %348 = vmax.xlane.f32.xlu1 %v219_v11 }
  0x61   : > { %332 = vmax.xlane.f32.xlu0 %v211_v6  ;;  %v300_v6 = vadd.s32 4294967240, %v925_v22 }
  0x68   : > { %352 = vmax.xlane.f32.xlu2 %v221_v15  ;;  %336 = vmax.xlane.f32.xlu1 %v213_v5 }
  0x69   : > { %350 = vmax.xlane.f32.xlu0 %v220_v16 }
  0x70   : > { %255 = vadd.xlane.f32.xlu2 %v223_v17  ;;  %354 = vmax.xlane.f32.xlu1 %v222_v14 }
  0x71   : > { %338 = vmax.xlane.f32.xlu0 %v214_v10 }
  0x78   : > { %356 = vmax.xlane.f32.xlu1 %v223_v17 }
  0x79   : > { %340 = vmax.xlane.f32.xlu0 %v215_v9 }
  0x9b   : > { %v234_v19 = vpop.xlane.xlu2 %233  ;;  %v230_v20 = vpop.xlane.xlu1 %229 }
  0x9c   : > { %v226_v21 = vpop.xlane.xlu0 %225  ;;  %v281_v32 = vperm.slane %v230_v20, %v931_v24  ;;  %v289_v35 = vperm.slane %v234_v19, %v937_v28 }
  0x9d   : > { %v275_v30 = vperm.slane %v226_v21, %v925_v22 }
  0xa3   : > { %v236_v25 = vpop.xlane.xlu2 %235  ;;  %v232_v27 = vpop.xlane.xlu1 %231 }
  0xa4   : > { %v228_v29 = vpop.xlane.xlu0 %227  ;;  %v285_v33 = vperm.slane %v232_v27, %v934_v26  ;;  %v293_v5 = vperm.slane %v236_v25, %v955_v61 }
  0xa5   : > { %v277_v31 = vperm.slane %v228_v29, %v928_v23 }
  0xa7   : > { %v279_v34 = vsel %vm278_vm1, %v277_v31, %v275_v30 }
  0xa8   : > { %v283_v36 = vsel %vm282_vm2, %v281_v32, %v279_v34 }
  0xa9   : > { %v287_v37 = vsel %vm286_vm3, %v285_v33, %v283_v36  ;;  %v224_v33 = vld [vmem:[#allocation2] sm:$0x3] }
  0xaa   : > { %v291_v38 = vsel %vm290_vm4, %v289_v35, %v287_v37 }
  0xab   : > { %v242_v39 = vpop.xlane.xlu2 %241  ;;  %v240_v40 = vpop.xlane.xlu1 %239  ;;  %v295_v13 = vsel %vm294_vm5, %v293_v5, %v291_v38 }
  0xac   : > { %v238_v41 = vpop.xlane.xlu0 %237  ;;  %v304_v56 = vperm.slane %v242_v39, %v925_v22  ;;  %v301_v15 = vperm.slane %v240_v40, %v300_v6 }
  0xad   : > { %v297_v9 = vperm.slane %v238_v41, %v959_v63 }
  0xaf   : > { %v299_v19 = vsel %vm298_vm6, %v297_v9, %v295_v13 }
  0xb0   : > { %v303_v35 = vsel %vm302_vm7, %v301_v15, %v299_v19 }
  0xb3   : > { %v248_v42 = vpop.xlane.xlu2 %247  ;;  %v246_v43 = vpop.xlane.xlu1 %245 }
  0xb4   : > { %v244_v44 = vpop.xlane.xlu0 %243  ;;  %v307_v59 = vperm.slane %v246_v43, %v931_v24  ;;  %v309_v62 = vperm.slane %v248_v42, %v934_v26 }
  0xb5   : > { %v305_v57 = vperm.slane %v244_v44, %v928_v23 }
  0xb7   : > { %v306_v60 = vsel %vm278_vm1, %v305_v57, %v304_v56  ;;  %v325_v57 = vld [vmem:[#allocation3] sm:$0x3] }
  0xb8   : > { %v308_v0 = vsel %vm282_vm2, %v307_v59, %v306_v60 }
  0xb9   : > { %v310_v8 = vsel %vm286_vm3, %v309_v62, %v308_v0 }
  0xbb   : > { %v254_v45 = vpop.xlane.xlu2 %253  ;;  %v252_v46 = vpop.xlane.xlu1 %251 }
  0xbc   : > { %v250_v47 = vpop.xlane.xlu0 %249  ;;  %v313_v7 = vperm.slane %v252_v46, %v955_v61  ;;  %v315_v14 = vperm.slane %v254_v45, %v959_v63 }
  0xbd   : > { %v311_v1 = vperm.slane %v250_v47, %v937_v28 }
  0xbf   : > { %v312_v10 = vsel %vm290_vm4, %v311_v1, %v310_v8 }
  0xc0   : > { %v314_v16 = vsel %vm294_vm5, %v313_v7, %v312_v10 }
  0xc1   : > { %v316_v34 = vsel %vm298_vm6, %v315_v14, %v314_v16 }
  0xc3   : > { %v343_v48 = vpop.xlane.xlu2 %342  ;;  %v329_v49 = vpop.xlane.xlu1 %328 }
  0xc4   : > { %v327_v50 = vpop.xlane.xlu0 %326  ;;  %v389_v11 = vperm.slane %v343_v48, %v925_v22  ;;  %v375_v17 = vperm.slane %v329_v49, %v928_v23 }
  0xc5   : > { %v374_v18 = vperm.slane %v327_v50, %v925_v22 }
  0xcb   : > { %v347_v51 = vpop.xlane.xlu2 %346  ;;  %v331_v52 = vpop.xlane.xlu1 %330 }
  0xcc   : > { %v345_v53 = vpop.xlane.xlu0 %344  ;;  %v392_v20 = vperm.slane %v347_v51, %v931_v24  ;;  %v377_v21 = vperm.slane %v331_v52, %v931_v24  ;;  %v376_v24 = vsel %vm278_vm1, %v375_v17, %v374_v18 }
  0xcd   : > { %v390_v12 = vperm.slane %v345_v53, %v928_v23 }
  0xce   : > { %v378_v37 = vsel %vm282_vm2, %v377_v21, %v376_v24 }
  0xcf   : > { %v391_v29 = vsel %vm278_vm1, %v390_v12, %v389_v11 }
  0xd0   : > { %v393_v38 = vsel %vm282_vm2, %v392_v20, %v391_v29 }
  0xd3   : > { %v948_v54 = vpop.xlane.xlu2 %334  ;;  %v349_v55 = vpop.xlane.xlu1 %348 }
  0xd4   : > { %v333_v58 = vpop.xlane.xlu0 %332  ;;  %v394_v30 = vperm.slane %v349_v55, %v934_v26 }
  0xd5   : > { %v379_v23 = vperm.slane %v333_v58, %v934_v26  ;;  %v381_v26 = vperm.slane %v948_v54, %v937_v28 }
  0xd6   : > { %v395_v40 = vsel %vm286_vm3, %v394_v30, %v393_v38 }
  0xd7   : > { %v380_v43 = vsel %vm286_vm3, %v379_v23, %v378_v37 }
  0xdb   : > { %v353_v2 = vpop.xlane.xlu2 %352  ;;  %v337_v3 = vpop.xlane.xlu1 %336 }
  0xdc   : > { %v351_v4 = vpop.xlane.xlu0 %350  ;;  %v398_v41 = vperm.slane %v353_v2, %v955_v61  ;;  %v383_v44 = vperm.slane %v337_v3, %v955_v61 }
  0xdd   : > { %v396_v22 = vperm.slane %v351_v4, %v937_v28  ;;  %v382_v28 = vsel %vm290_vm4, %v381_v26, %v380_v43 }
  0xde   : > { %v384_v52 = vsel %vm294_vm5, %v383_v44, %v382_v28 }
  0xdf   : > { %v397_v45 = vsel %vm290_vm4, %v396_v22, %v395_v40 }
  0xe0   : > { %v399_v49 = vsel %vm294_vm5, %v398_v41, %v397_v45 }
  0xe3   : > { %v256_v25 = vpop.xlane.xlu2 %255  ;;  %v355_v27 = vpop.xlane.xlu1 %354 }
  0xe4   : > { %v317_v31 = vperm.slane %v256_v25, %v300_v6  ;;  %v339_v32 = vpop.xlane.xlu0 %338  ;;  %v400_v46 = vperm.slane %v355_v27, %v959_v63 }
  0xe5   : > { %v385_v47 = vperm.slane %v339_v32, %v959_v63 }
  0xe6   : > { %v318_v36 = vsel %vm302_vm7, %v317_v31, %v316_v34  ;;  %v401_v53 = vsel %vm298_vm6, %v400_v46, %v399_v49 }
  0xe7   : > { %v320_v39 = vsel %vm319_vm8, %v318_v36, %v303_v35  ;;  %v386_v55 = vsel %vm298_vm6, %v385_v47, %v384_v52 }
  0xe8   : > { %v322_v42 = vadd.f32 %v320_v39, %v224_v33 }
  0xea   : > { %324 = vst.msk [vmem:[#allocation2] sm:$0x3] %vm323_vm9, %v322_v42 }
  0xeb   : > { %v357_v48 = vpop.xlane.xlu1 %356 }
  0xec   : > { %v402_v50 = vperm.slane %v357_v48, %v300_v6  ;;  %v341_v51 = vpop.xlane.xlu0 %340 }
  0xed   : > { %v387_v54 = vperm.slane %v341_v51, %v300_v6 }
  0xee   : > { %v403_v56 = vsel %vm302_vm7, %v402_v50, %v401_v53 }
  0xef   : > { %v388_v58 = vsel %vm302_vm7, %v387_v54, %v386_v55  ;;  %411 = sbr.rel (%p611_p0) target bundleno = 541 (0x21d), region = 44 }
  0xf0   : > { %v404_v59 = vsel %vm319_vm8, %v403_v56, %v388_v58 }
  0xf1   : > { %v406_v60 = vmax.f32 %v325_v57, %v404_v59 }
  0xf3   : > { %407 = vst.msk [vmem:[#allocation3] sm:$0x3] %vm323_vm9, %v406_v60 }
  0xf4   : > { %v420_v61 = vld [vmem:[%s1071_s1] sm:$0xf]  ;;  %vm429_vm10 = vcmask 523264   ;;  %vm418_vm11 = vcmask 1041408   ;;  %v428_v1 = vld [vmem:[%s1072_s2 + $0x38] sm:$0xff]  ;;  %vm457_vm12 = vcmask 31744  }
  0xf5   : > { %v412_v62 = vld [vmem:[#allocation2] sm:$0x3]  ;;  %612 = vmatpush.xpose.msk.msra.mxu0 %vm429_vm10, %v420_v61  ;;  %614 = vmatpush.xpose.msk.msra.mxu1 %vm457_vm12, %v428_v1  ;;  %v427_v3 = vld [vmem:[%s1072_s2 + $0x30] sm:$0xff]  ;;  %v426_v5 = vld [vmem:[%s1072_s2 + $0x28] sm:$0xff] }
  0xf6   : > { %v413_v63 = vmul.f32 0.00390625, %v412_v62  ;;  %v425_v6 = vld [vmem:[%s1072_s2 + $0x20] sm:$0xff]  ;;  %v424_v7 = vld [vmem:[%s1072_s2 + $0x18] sm:$0xff]  ;;  %v423_v8 = vld [vmem:[%s1072_s2 + $0x10] sm:$0xff] }
  0xf7   : > { %v422_v9 = vld [vmem:[%s1072_s2 + $0x8] sm:$0xff]  ;;  %v421_v10 = vld [vmem:[%s1072_s2] sm:$0xff] }
  0xf9   : > { %615 = vmatpush.xpose.msk.msra.mxu1 %vm457_vm12, %v427_v3 }
  0xfa   : > { %v414_v0 = vld [vmem:[#allocation3] sm:$0x3] }
  0xfb   : > { %v416_v2 = vrot.slane %v414_v0, 6 }
  0xfd   : > { %v419_v4 = vsel %vm418_vm11, %v413_v63, %v416_v2  ;;  %616 = vmatpush.xpose.msk.msra.mxu1 %vm457_vm12, %v426_v5 }
  0xfe   : > { %613 = vmatmul.msk.f32.vlgmr.msra.gmra.mxu0 %vm429_vm10, %v419_v4 }
 0x101   : > { %617 = vmatpush.xpose.msk.msra.mxu1 %vm457_vm12, %v425_v6 }
 0x105   : > { %618 = vmatpush.xpose.msk.msra.mxu1 %vm457_vm12, %v424_v7 }
 0x109   : > { %619 = vmatpush.xpose.msk.msra.mxu1 %vm457_vm12, %v423_v8 }
 0x10d   : > { %620 = vmatpush.xpose.msk.msra.mxu1 %vm457_vm12, %v422_v9 }
 0x111   : > { %621 = vmatpush.xpose.msk.msra.mxu1 %vm457_vm12, %v421_v10 }
 0x17b   : > { %v453_v11 = vpop.f32.mrf.mxu0 }
 0x17c   : > { %v456_v12 = vmax.f32 %v453_v11, 0.0 }
 0x17e   : > { %622 = vmatmul.msk.f32.vlgmr.msra.gmra.mxu1 %vm457_vm12, %v456_v12 }
 0x1fb   : > { %v502_v13 = vpop.f32.mrf.mxu1 }
 0x1fc   : > { %v506_v14 = vrot.slane %v502_v13, 2 }
 0x1fe   : > { %v508_v15 = vadd.f32 %v506_v14, %v502_v13 }
 0x200   : > { %v623_v16 = vmul.f32 -1.442695, %v508_v15 }
 0x202   : > { %695 = vpow2.f32 %v623_v16 }
 0x208   : > { %v696_v17 = vpop.eup %695 }
 0x209   : > { %v512_v18 = vadd.f32 1.0, %v696_v17 }
 0x20b   : > { %697 = vrcp.f32 %v512_v18  ;;  %v524_v25 = vand.u32 2147483648, %v512_v18  ;;  %v522_v29 = vand.u32 2147483647, %v512_v18  ;;  %vm518_vm14 = vweird.f32 %v512_v18 }
 0x20d   : > { %v525_v31 = vor.u32 1.1754944e-38, %v524_v25  ;;  %vm523_vm0 = vcmp.eq.f32.partialorder %v522_v29, 8.507059e+37 }
 0x211   : > { %v698_v19 = vpop.eup %697 }
 0x212   : > { %v514_v20 = vmul.f32 %v698_v19, %v512_v18  ;;  %vm519_vm13 = vweird.f32 %v698_v19 }
 0x213   : > { %vm520_vm15 = vmor %vm518_vm14, %vm519_vm13 }
 0x214   : > { %v515_v21 = vsub.f32 1.0, %v514_v20 }
 0x216   : > { %v516_v27 = vmul.f32 %v698_v19, %v515_v21 }
 0x218   : > { %v517_v30 = vadd.f32 %v698_v19, %v516_v27 }
 0x21a   : > { %v521_v32 = vsel %vm520_vm15, %v698_v19, %v517_v30 }
 0x21b   : > { %v526_v23 = vsel %vm523_vm0, %v525_v31, %v521_v32 }
 0x21c   : > { %528 = vst.msk [vmem:[#allocation7] sm:$0x3] %vm323_vm9, %v526_v23 }
 0x21d PF: > { %p639_p1 = scmp.eq.s32.totalorder %s603_s18, 1  ;;  %s539_s21 = sshll.u32 %s1073_s3, 4  ;;  %s540_s21 = int_to_ptr.hbm [resolvable:$true] %s539_s21 }
 0x21e   : > { %s818_s23 = smov [#allocation7]  }
 0x21f   : > { %s537_s25 = sshll.u32 %s818_s23, 4  ;;  %s538_s25 = int_to_ptr.vmem [resolvable:$true] %s537_s25 }
 0x220   : > { %631 = dma.vmem_to_hbm [thread:$0]  (%p639_p1), %s538_s25, 32, %s540_s21, [#allocation6]  }
 0x221   : > { %786 = dma.done.wait (%p639_p1), [#allocation6], 32  }
 0x222   : > { %788 = vsyncadd (%p639_p1), [#allocation6], 4294967264 }
 0x223 PF: > { %s17_s17 = sadd.s32 1, %s811_s17   ;;  %s1076_s12 = smov %s795_s13 }
 0x224   : > { %p14_p2 = scmp.ge.s32.totalorder %s17_s17, 4   ;;  %s1077_s13 = smov %s799_s14 }
 0x225   : > { %s1078_s14 = smov %s890_s24  ;;  %s1079_s15 = smov %s807_s16 }
 0x226   : > { %s1080_s16 = smov %s1082_s19  ;;  %16 = sbr.rel (!%p14_p2) target bundleno = 5 (0x5), region = 78 }
 0x22b   :  { %553 = vsyncpa [#allocation5], 1 }
 0x22c   :  { %555 = vsyncpa [#allocation5 + $0x1], 1 }
 0x22d   :  { %556 = vsyncpa [#allocation6], 1 }
 0x22e   :  { %558 = vsyncpa [#allocation6 + $0x1], 1 }

</bundles_post_ra>
